<compile_context>
chip_gen: v5e
topology: v5e:2x2
jax: 0.10.0
libtpu: 0.0.40
codegen_flags: <defaults>
</compile_context>

<pallas_src>
import math

import jax
import jax.numpy as jnp
import numpy as np
from jax.experimental import pallas as pl
from jax.experimental.pallas import tpu as pltpu

HID = 768
RED = 128
USER_DIM = 12
TB_TARGET = 512          # batch tile: multiple of 8 sublanes / MXU rows.


def _round_up(x, m):
    return -(-x // m) * m


def clfkgmax_kernel(
    pooled_text_ref, pooled_desc_ref, user_ref, kg_ref,   # activations (tiled)
    w_r1_ref, b_r1_ref,          # linear_reduce_1: 768 -> 128  (bf16 W)
    w_r2_ref, b_r2_ref,          # linear_reduce_2: 768 -> 128  (bf16 W)
    w_user_ref, b_user_ref,      # linear_user:      12 -> 128  (f32 W)
    w_kg_ref, b_kg_ref,          # bert_kg:         768 -> 128  (bf16 W)
    w_clf_row_ref, b_clf_ref,    # classifier:      128 -> 1    (row form)
    out_ref,
):
    # dropout == identity (inference)
    t = jnp.dot(pooled_text_ref[...], w_r1_ref[...],
                preferred_element_type=jnp.float32) + b_r1_ref[...]
    d = jnp.dot(pooled_desc_ref[...], w_r2_ref[...],
                preferred_element_type=jnp.float32) + b_r2_ref[...]
    u = jnp.dot(user_ref[...], w_user_ref[...],
                preferred_element_type=jnp.float32) + b_user_ref[...]
    k = jnp.dot(kg_ref[...], w_kg_ref[...],
                preferred_element_type=jnp.float32) + b_kg_ref[...]

    # torch.stack([...], 1).max(1)[0]  ==  elementwise max over the 4 branches
    combined = jnp.maximum(jnp.maximum(t, d), jnp.maximum(u, k))

    # classifier (128 -> 1) on the VPU/XLU: broadcast-mul + lane reduce.
    out_ref[...] = jnp.sum(combined * w_clf_row_ref[...], axis=-1,
                           keepdims=True) + b_clf_ref[0, 0]


@jax.jit
def clfkgmax_forward(pooled_text, pooled_desc, user_features, kg_features, params):
    B = pooled_text.shape[0]

    # --- batch tiling / padding (shapes are static under jit) ---
    Bp = _round_up(max(B, 1), 8)
    TB = TB_TARGET if Bp >= TB_TARGET else Bp
    Bp = _round_up(Bp, TB)

    def pad_b(x):
        if Bp == B:
            return x
        return jnp.pad(x, ((0, Bp - B), (0, 0)))

    # bf16 for the HBM-heavy 768-wide streams + their weights; f32 accumulate.
    pt = pad_b(pooled_text).astype(jnp.bfloat16)
    pd = pad_b(pooled_desc).astype(jnp.bfloat16)
    kg = pad_b(kg_features).astype(jnp.bfloat16)
    uf = pad_b(user_features)                              # tiny, keep f32

    w_r1 = params["w_r1"].astype(jnp.bfloat16)
    w_r2 = params["w_r2"].astype(jnp.bfloat16)
    w_kg = params["w_kg"].astype(jnp.bfloat16)

    args = (
        pt, pd, uf, kg,
        w_r1, params["b_r1"],
        w_r2, params["b_r2"],
        params["w_user"], params["b_user"],
        w_kg, params["b_kg"],
        params["w_clf_row"], params["b_clf"],
    )

    tiled = lambda shape: pl.BlockSpec(shape, lambda i: (i, 0))     # per-tile
    const = lambda shape: pl.BlockSpec(shape, lambda i: (0, 0))     # resident

    in_specs = [
        tiled((TB, HID)),            # pooled_text (bf16)
        tiled((TB, HID)),            # pooled_desc (bf16)
        tiled((TB, USER_DIM)),       # user_features (f32)
        tiled((TB, HID)),            # kg_features (bf16)
        const((HID, RED)), const((1, RED)),      # w_r1, b_r1
        const((HID, RED)), const((1, RED)),      # w_r2, b_r2
        const((USER_DIM, RED)), const((1, RED)), # w_user, b_user
        const((HID, RED)), const((1, RED)),      # w_kg, b_kg
        const((1, RED)), const((1, 1)),          # w_clf_row, b_clf
    ]
    out_spec = tiled((TB, 1))

    flops = Bp * (2 * HID * RED * 3 + 2 * USER_DIM * RED + 2 * RED)
    bytes_accessed = (
        Bp * (3 * HID * 2 + USER_DIM * 4 + 1 * 4)     # streamed activations
        + 3 * HID * RED * 2 + USER_DIM * RED * 4      # weights (resident)
        + 4 * RED * 4 + 4 + RED * 4                   # biases + clf row
    )

    out = pl.pallas_call(
        clfkgmax_kernel,
        out_shape=jax.ShapeDtypeStruct((Bp, 1), jnp.float32),
        grid=(Bp // TB,),
        in_specs=in_specs,
        out_specs=out_spec,
        compiler_params=pltpu.CompilerParams(
            dimension_semantics=("parallel",)),
        cost_estimate=pl.CostEstimate(
            flops=flops, transcendentals=0, bytes_accessed=bytes_accessed),
    )(*args)

    return out[:B] if Bp != B else out


def _init_linear(key, fan_in, fan_out):
    # PyTorch nn.Linear default init: U(-1/sqrt(fan_in), 1/sqrt(fan_in))
    kw, kb = jax.random.split(key)
    bound = 1.0 / math.sqrt(fan_in)
    # stored transposed: [in_features, out_features]
    w = jax.random.uniform(kw, (fan_in, fan_out), jnp.float32, -bound, bound)
    b = jax.random.uniform(kb, (1, fan_out), jnp.float32, -bound, bound)
    return w, b


def make_params(key):
    k1, k2, k3, k4, k5 = jax.random.split(key, 5)
    w_r1, b_r1 = _init_linear(k1, HID, RED)
    w_r2, b_r2 = _init_linear(k2, HID, RED)
    w_user, b_user = _init_linear(k3, USER_DIM, RED)
    w_kg, b_kg = _init_linear(k4, HID, RED)
    w_clf, b_clf = _init_linear(k5, RED, 1)          # (128, 1), (1, 1)
    return dict(
        w_r1=w_r1, b_r1=b_r1,
        w_r2=w_r2, b_r2=b_r2,
        w_user=w_user, b_user=b_user,
        w_kg=w_kg, b_kg=b_kg,
        w_clf_row=w_clf.T,                           # (1, 128) row form
        b_clf=b_clf,                                 # (1, 1)
    )


def reference_forward(pooled_text, pooled_desc, user_features, kg_features, p):
    t = pooled_text @ p["w_r1"] + p["b_r1"]
    d = pooled_desc @ p["w_r2"] + p["b_r2"]
    u = user_features @ p["w_user"] + p["b_user"]
    k = kg_features @ p["w_kg"] + p["b_kg"]
    combined = jnp.max(jnp.stack([t, d, u, k], axis=1), axis=1)
    return combined @ p["w_clf_row"].T + p["b_clf"]


def _run_and_check(B, key, params):
    kt, kd, ku, kk = jax.random.split(key, 4)
    pooled_text = jax.random.normal(kt, (B, HID), jnp.float32)
    pooled_desc = jax.random.normal(kd, (B, HID), jnp.float32)
    user_features = jax.random.normal(ku, (B, USER_DIM), jnp.float32)
    kg_features = jax.random.normal(kk, (B, HID), jnp.float32)

    out = clfkgmax_forward(pooled_text, pooled_desc, user_features,
                           kg_features, params)
    out = jax.block_until_ready(out)
    assert out.shape == (B, 1)

    ref = reference_forward(pooled_text, pooled_desc, user_features,
                            kg_features, params)
    # bf16 inputs/weights on the 768-wide branches -> relaxed tolerance.
    np.testing.assert_allclose(np.asarray(out), np.asarray(ref),
                               rtol=2e-2, atol=2e-2)


if __name__ == "__main__":
    key = jax.random.PRNGKey(0)
    kp, ka, kb, kc = jax.random.split(key, 4)
    params = make_params(kp)

    # Small canonical test (B=2): single tiny tile after padding.
    _run_and_check(2, ka, params)
    # Sub-tile, non-multiple-of-8 batch: single ragged->padded full tile.
    _run_and_check(300, kb, params)
    # Multi-tile batch: exercises the grid / padding / "parallel" path.
    _run_and_check(777, kc, params)

    print("KERNEL_OK")
</pallas_src>

<mosaic_0001>
module attributes {stable_mosaic.version = 11 : i64} {
  func.func @clfkgmax_kernel(%arg0: i32, %arg1: memref<8x768xbf16, #tpu.memory_space<vmem>>, %arg2: memref<8x768xbf16, #tpu.memory_space<vmem>>, %arg3: memref<8x12xf32, #tpu.memory_space<vmem>>, %arg4: memref<8x768xbf16, #tpu.memory_space<vmem>>, %arg5: memref<768x128xbf16, #tpu.memory_space<vmem>>, %arg6: memref<1x128xf32, #tpu.memory_space<vmem>>, %arg7: memref<768x128xbf16, #tpu.memory_space<vmem>>, %arg8: memref<1x128xf32, #tpu.memory_space<vmem>>, %arg9: memref<12x128xf32, #tpu.memory_space<vmem>>, %arg10: memref<1x128xf32, #tpu.memory_space<vmem>>, %arg11: memref<768x128xbf16, #tpu.memory_space<vmem>>, %arg12: memref<1x128xf32, #tpu.memory_space<vmem>>, %arg13: memref<1x128xf32, #tpu.memory_space<vmem>>, %arg14: memref<1x1xf32, #tpu.memory_space<vmem>>, %arg15: memref<8x1xf32, #tpu.memory_space<vmem>>) attributes {dimension_semantics = [#tpu.dimension_semantics<parallel>], iteration_bounds = array<i64: 1>, scalar_prefetch = 0 : i64, scratch_operands = 0 : i64, tpu.core_type = #tpu.core_type<tc>, window_params = [{transform_indices = @transform_0, window_bounds = array<i64: 8, 768>}, {transform_indices = @transform_1, window_bounds = array<i64: 8, 768>}, {transform_indices = @transform_2, window_bounds = array<i64: 8, 12>}, {transform_indices = @transform_3, window_bounds = array<i64: 8, 768>}, {pipeline_mode = #tpu.pipeline_mode<synchronous>, transform_indices = @transform_4, window_bounds = array<i64: 768, 128>}, {pipeline_mode = #tpu.pipeline_mode<synchronous>, transform_indices = @transform_5, window_bounds = array<i64: 1, 128>}, {pipeline_mode = #tpu.pipeline_mode<synchronous>, transform_indices = @transform_6, window_bounds = array<i64: 768, 128>}, {pipeline_mode = #tpu.pipeline_mode<synchronous>, transform_indices = @transform_7, window_bounds = array<i64: 1, 128>}, {pipeline_mode = #tpu.pipeline_mode<synchronous>, transform_indices = @transform_8, window_bounds = array<i64: 12, 128>}, {pipeline_mode = #tpu.pipeline_mode<synchronous>, transform_indices = @transform_9, window_bounds = array<i64: 1, 128>}, {pipeline_mode = #tpu.pipeline_mode<synchronous>, transform_indices = @transform_10, window_bounds = array<i64: 768, 128>}, {pipeline_mode = #tpu.pipeline_mode<synchronous>, transform_indices = @transform_11, window_bounds = array<i64: 1, 128>}, {pipeline_mode = #tpu.pipeline_mode<synchronous>, transform_indices = @transform_12, window_bounds = array<i64: 1, 128>}, {pipeline_mode = #tpu.pipeline_mode<synchronous>, transform_indices = @transform_13, window_bounds = array<i64: 1, 1>}, {transform_indices = @transform_14, window_bounds = array<i64: 8, 1>}]} {
    %c0 = arith.constant 0 : index
    %c0_0 = arith.constant 0 : index
    %0 = vector.load %arg1[%c0, %c0_0] : memref<8x768xbf16, #tpu.memory_space<vmem>>, vector<8x768xbf16>
    %c0_1 = arith.constant 0 : index
    %c0_2 = arith.constant 0 : index
    %1 = vector.load %arg5[%c0_1, %c0_2] : memref<768x128xbf16, #tpu.memory_space<vmem>>, vector<768x128xbf16>
    %cst = arith.constant dense<0.000000e+00> : vector<8x128xf32>
    %2 = tpu.matmul %0, %1, %cst {dimension_numbers = #tpu.dot_dimension_numbers<[1], [0], [0], [1], [0, 0, 1, 1], [], []>} : vector<8x768xbf16>, vector<768x128xbf16>, vector<8x128xf32> -> vector<8x128xf32>
    %c0_3 = arith.constant 0 : index
    %c0_4 = arith.constant 0 : index
    %3 = vector.load %arg6[%c0_3, %c0_4] : memref<1x128xf32, #tpu.memory_space<vmem>>, vector<1x128xf32>
    %4 = vector.broadcast %3 : vector<1x128xf32> to vector<8x128xf32>
    %5 = arith.addf %2, %4 : vector<8x128xf32>
    %c0_5 = arith.constant 0 : index
    %c0_6 = arith.constant 0 : index
    %6 = vector.load %arg2[%c0_5, %c0_6] : memref<8x768xbf16, #tpu.memory_space<vmem>>, vector<8x768xbf16>
    %c0_7 = arith.constant 0 : index
    %c0_8 = arith.constant 0 : index
    %7 = vector.load %arg7[%c0_7, %c0_8] : memref<768x128xbf16, #tpu.memory_space<vmem>>, vector<768x128xbf16>
    %cst_9 = arith.constant dense<0.000000e+00> : vector<8x128xf32>
    %8 = tpu.matmul %6, %7, %cst_9 {dimension_numbers = #tpu.dot_dimension_numbers<[1], [0], [0], [1], [0, 0, 1, 1], [], []>} : vector<8x768xbf16>, vector<768x128xbf16>, vector<8x128xf32> -> vector<8x128xf32>
    %c0_10 = arith.constant 0 : index
    %c0_11 = arith.constant 0 : index
    %9 = vector.load %arg8[%c0_10, %c0_11] : memref<1x128xf32, #tpu.memory_space<vmem>>, vector<1x128xf32>
    %10 = vector.broadcast %9 : vector<1x128xf32> to vector<8x128xf32>
    %11 = arith.addf %8, %10 : vector<8x128xf32>
    %c0_12 = arith.constant 0 : index
    %c0_13 = arith.constant 0 : index
    %12 = vector.load %arg3[%c0_12, %c0_13] : memref<8x12xf32, #tpu.memory_space<vmem>>, vector<8x12xf32>
    %c0_14 = arith.constant 0 : index
    %c0_15 = arith.constant 0 : index
    %13 = vector.load %arg9[%c0_14, %c0_15] : memref<12x128xf32, #tpu.memory_space<vmem>>, vector<12x128xf32>
    %cst_16 = arith.constant dense<0.000000e+00> : vector<8x128xf32>
    %14 = tpu.matmul %12, %13, %cst_16 {dimension_numbers = #tpu.dot_dimension_numbers<[1], [0], [0], [1], [0, 0, 1, 1], [], []>} : vector<8x12xf32>, vector<12x128xf32>, vector<8x128xf32> -> vector<8x128xf32>
    %c0_17 = arith.constant 0 : index
    %c0_18 = arith.constant 0 : index
    %15 = vector.load %arg10[%c0_17, %c0_18] : memref<1x128xf32, #tpu.memory_space<vmem>>, vector<1x128xf32>
    %16 = vector.broadcast %15 : vector<1x128xf32> to vector<8x128xf32>
    %17 = arith.addf %14, %16 : vector<8x128xf32>
    %c0_19 = arith.constant 0 : index
    %c0_20 = arith.constant 0 : index
    %18 = vector.load %arg4[%c0_19, %c0_20] : memref<8x768xbf16, #tpu.memory_space<vmem>>, vector<8x768xbf16>
    %c0_21 = arith.constant 0 : index
    %c0_22 = arith.constant 0 : index
    %19 = vector.load %arg11[%c0_21, %c0_22] : memref<768x128xbf16, #tpu.memory_space<vmem>>, vector<768x128xbf16>
    %cst_23 = arith.constant dense<0.000000e+00> : vector<8x128xf32>
    %20 = tpu.matmul %18, %19, %cst_23 {dimension_numbers = #tpu.dot_dimension_numbers<[1], [0], [0], [1], [0, 0, 1, 1], [], []>} : vector<8x768xbf16>, vector<768x128xbf16>, vector<8x128xf32> -> vector<8x128xf32>
    %c0_24 = arith.constant 0 : index
    %c0_25 = arith.constant 0 : index
    %21 = vector.load %arg12[%c0_24, %c0_25] : memref<1x128xf32, #tpu.memory_space<vmem>>, vector<1x128xf32>
    %22 = vector.broadcast %21 : vector<1x128xf32> to vector<8x128xf32>
    %23 = arith.addf %20, %22 : vector<8x128xf32>
    %24 = arith.maximumf %5, %11 : vector<8x128xf32>
    %25 = arith.maximumf %17, %23 : vector<8x128xf32>
    %26 = arith.maximumf %24, %25 : vector<8x128xf32>
    %c0_26 = arith.constant 0 : index
    %c0_27 = arith.constant 0 : index
    %27 = vector.load %arg13[%c0_26, %c0_27] : memref<1x128xf32, #tpu.memory_space<vmem>>, vector<1x128xf32>
    %28 = vector.broadcast %27 : vector<1x128xf32> to vector<8x128xf32>
    %29 = arith.mulf %26, %28 : vector<8x128xf32>
    %cst_28 = arith.constant dense<0.000000e+00> : vector<8xf32>
    %30 = vector.multi_reduction <add>, %29, %cst_28 [1] : vector<8x128xf32> to vector<8xf32>
    %31 = vector.shape_cast %30 : vector<8xf32> to vector<8x1xf32>
    %c0_29 = arith.constant 0 : index
    %c0_30 = arith.constant 0 : index
    %32 = vector.load %arg14[%c0_29, %c0_30] : memref<1x1xf32, #tpu.memory_space<vmem>>, vector<1x1xf32>
    %33 = vector.extract %32[0, 0] : f32 from vector<1x1xf32>
    %34 = vector.broadcast %33 : f32 to vector<8x1xf32>
    %35 = arith.addf %31, %34 : vector<8x1xf32>
    %c0_31 = arith.constant 0 : index
    %c0_32 = arith.constant 0 : index
    %36 = vector.load %arg15[%c0_31, %c0_32] : memref<8x1xf32, #tpu.memory_space<vmem>>, vector<8x1xf32>
    tpu.vector_store %arg15[%c0_31, %c0_32], %35 {strides = array<i32>} : memref<8x1xf32, #tpu.memory_space<vmem>>, vector<8x1xf32>,
    return
  }
  func.func @transform_0(%arg0: i32) -> (i32, i32) {
    %c0_i32 = arith.constant 0 : i32
    %c0_i32_0 = arith.constant 0 : i32
    return %arg0, %c0_i32 : i32, i32
  }
  func.func @transform_1(%arg0: i32) -> (i32, i32) {
    %c0_i32 = arith.constant 0 : i32
    %c0_i32_0 = arith.constant 0 : i32
    return %arg0, %c0_i32 : i32, i32
  }
  func.func @transform_2(%arg0: i32) -> (i32, i32) {
    %c0_i32 = arith.constant 0 : i32
    %c0_i32_0 = arith.constant 0 : i32
    return %arg0, %c0_i32 : i32, i32
  }
  func.func @transform_3(%arg0: i32) -> (i32, i32) {
    %c0_i32 = arith.constant 0 : i32
    %c0_i32_0 = arith.constant 0 : i32
    return %arg0, %c0_i32 : i32, i32
  }
  func.func @transform_4(%arg0: i32) -> (i32, i32) {
    %c0_i32 = arith.constant 0 : i32
    %c0_i32_0 = arith.constant 0 : i32
    %c0_i32_1 = arith.constant 0 : i32
    return %c0_i32, %c0_i32_0 : i32, i32
  }
  func.func @transform_5(%arg0: i32) -> (i32, i32) {
    %c0_i32 = arith.constant 0 : i32
    %c0_i32_0 = arith.constant 0 : i32
    %c0_i32_1 = arith.constant 0 : i32
    return %c0_i32, %c0_i32_0 : i32, i32
  }
  func.func @transform_6(%arg0: i32) -> (i32, i32) {
    %c0_i32 = arith.constant 0 : i32
    %c0_i32_0 = arith.constant 0 : i32
    %c0_i32_1 = arith.constant 0 : i32
    return %c0_i32, %c0_i32_0 : i32, i32
  }
  func.func @transform_7(%arg0: i32) -> (i32, i32) {
    %c0_i32 = arith.constant 0 : i32
    %c0_i32_0 = arith.constant 0 : i32
    %c0_i32_1 = arith.constant 0 : i32
    return %c0_i32, %c0_i32_0 : i32, i32
  }
  func.func @transform_8(%arg0: i32) -> (i32, i32) {
    %c0_i32 = arith.constant 0 : i32
    %c0_i32_0 = arith.constant 0 : i32
    %c0_i32_1 = arith.constant 0 : i32
    return %c0_i32, %c0_i32_0 : i32, i32
  }
  func.func @transform_9(%arg0: i32) -> (i32, i32) {
    %c0_i32 = arith.constant 0 : i32
    %c0_i32_0 = arith.constant 0 : i32
    %c0_i32_1 = arith.constant 0 : i32
    return %c0_i32, %c0_i32_0 : i32, i32
  }
  func.func @transform_10(%arg0: i32) -> (i32, i32) {
    %c0_i32 = arith.constant 0 : i32
    %c0_i32_0 = arith.constant 0 : i32
    %c0_i32_1 = arith.constant 0 : i32
    return %c0_i32, %c0_i32_0 : i32, i32
  }
  func.func @transform_11(%arg0: i32) -> (i32, i32) {
    %c0_i32 = arith.constant 0 : i32
    %c0_i32_0 = arith.constant 0 : i32
    %c0_i32_1 = arith.constant 0 : i32
    return %c0_i32, %c0_i32_0 : i32, i32
  }
  func.func @transform_12(%arg0: i32) -> (i32, i32) {
    %c0_i32 = arith.constant 0 : i32
    %c0_i32_0 = arith.constant 0 : i32
    %c0_i32_1 = arith.constant 0 : i32
    return %c0_i32, %c0_i32_0 : i32, i32
  }
  func.func @transform_13(%arg0: i32) -> (i32, i32) {
    %c0_i32 = arith.constant 0 : i32
    %c0_i32_0 = arith.constant 0 : i32
    %c0_i32_1 = arith.constant 0 : i32
    return %c0_i32, %c0_i32_0 : i32, i32
  }
  func.func @transform_14(%arg0: i32) -> (i32, i32) {
    %c0_i32 = arith.constant 0 : i32
    %c0_i32_0 = arith.constant 0 : i32
    return %arg0, %c0_i32 : i32, i32
  }
}

</mosaic_0001>

<bundles_post_ra>
// kernel: clfkgmax_forward.1
= control target key start
LH: loop header
LB: loop body
LE: loop exit
PB: predicated region body
PF: predicated region fallthrough
CT: control target
= control target key end

     0   :  { %vm1040_vm0 = vcmask 1043456   ;;  %vm1036_vm1 = vcmask 97280   ;;  %vm1568_vm2 = vcmask 7168   ;;  %s2867_s4 = inlined_call_operand.vmem [shape: bf16[768,128], index: 4, kind: input, shape index: {}]   ;;  %s2868_s0 = inlined_call_operand.vmem [shape: bf16[8,768], index: 0, kind: input, shape index: {}]   ;;  %s2869_s5 = inlined_call_operand.vmem [shape: f32[1,128], index: 5, kind: input, shape index: {}]   ;;  %s2870_s6 = inlined_call_operand.vmem [shape: bf16[768,128], index: 6, kind: input, shape index: {}]   ;;  %s2871_s1 = inlined_call_operand.vmem [shape: bf16[8,768], index: 1, kind: input, shape index: {}]   ;;  %s2872_s7 = inlined_call_operand.vmem [shape: f32[1,128], index: 7, kind: input, shape index: {}]   ;;  %s2873_s10 = inlined_call_operand.vmem [shape: bf16[768,128], index: 10, kind: input, shape index: {}]   ;;  %s2874_s8 = inlined_call_operand.vmem [shape: f32[12,128], index: 8, kind: input, shape index: {}]   ;;  %s2875_s2 = inlined_call_operand.vmem [shape: f32[8,12], index: 2, kind: input, shape index: {}]   ;;  %s2876_s11 = inlined_call_operand.vmem [shape: f32[1,128], index: 11, kind: input, shape index: {}]   ;;  %s2877_s3 = inlined_call_operand.vmem [shape: bf16[8,768], index: 3, kind: input, shape index: {}]   ;;  %s2878_s9 = inlined_call_operand.vmem [shape: f32[1,128], index: 9, kind: input, shape index: {}]   ;;  %s2879_s12 = inlined_call_operand.vmem [shape: f32[1,128], index: 12, kind: input, shape index: {}]   ;;  %s2880_s13 = inlined_call_operand.<no memory space> [shape: f32[1,1], index: 13, kind: input, shape index: {}]   ;;  %s2881_s14 = inlined_call_operand.vmem [shape: f32[8,1], index: 14, kind: output, shape index: {}]  }
   0x1   :  { %v2167_v0 = vld [vmem:[%s2867_s4 + $0x78] sm:$0xff]  ;;  %v2166_v4 = vld [vmem:[%s2867_s4 + $0x70] sm:$0xff]  ;;  %v2165_v8 = vld [vmem:[%s2867_s4 + $0x68] sm:$0xff] }
   0x2   :  { %v2175_v1 = vld [vmem:[%s2867_s4 + $0xb8] sm:$0xff]  ;;  %474 = vmatpush.bf16.msra.mxu1 %v2167_v0  ;;  %v2174_v5 = vld [vmem:[%s2867_s4 + $0xb0] sm:$0xff]  ;;  %v2173_v9 = vld [vmem:[%s2867_s4 + $0xa8] sm:$0xff] }
   0x3   :  { %v2159_v2 = vld [vmem:[%s2867_s4 + $0x38] sm:$0xff]  ;;  %487 = vmatpush.bf16.msra.mxu2 %v2175_v1  ;;  %v2158_v6 = vld [vmem:[%s2867_s4 + $0x30] sm:$0xff]  ;;  %v2157_v10 = vld [vmem:[%s2867_s4 + $0x28] sm:$0xff] }
   0x4   :  { %v2183_v3 = vld [vmem:[%s2867_s4 + $0xf8] sm:$0xff]  ;;  %461 = vmatpush.bf16.msra.mxu0 %v2159_v2  ;;  %v2182_v7 = vld [vmem:[%s2867_s4 + $0xf0] sm:$0xff]  ;;  %v2181_v11 = vld [vmem:[%s2867_s4 + $0xe8] sm:$0xff] }
   0x5   :  { %500 = vmatpush.bf16.msra.mxu3 %v2183_v3  ;;  %v2164_v12 = vld [vmem:[%s2867_s4 + $0x60] sm:$0xff]  ;;  %v2163_v16 = vld [vmem:[%s2867_s4 + $0x58] sm:$0xff]  ;;  %v2162_v20 = vld [vmem:[%s2867_s4 + $0x50] sm:$0xff] }
   0x6   :  { %475 = vmatpush.bf16.msra.mxu1 %v2166_v4  ;;  %v2172_v13 = vld [vmem:[%s2867_s4 + $0xa0] sm:$0xff]  ;;  %v2171_v17 = vld [vmem:[%s2867_s4 + $0x98] sm:$0xff]  ;;  %v2170_v21 = vld [vmem:[%s2867_s4 + $0x90] sm:$0xff] }
   0x7   :  { %488 = vmatpush.bf16.msra.mxu2 %v2174_v5  ;;  %v2156_v14 = vld [vmem:[%s2867_s4 + $0x20] sm:$0xff]  ;;  %v2155_v18 = vld [vmem:[%s2867_s4 + $0x18] sm:$0xff]  ;;  %v2154_v22 = vld [vmem:[%s2867_s4 + $0x10] sm:$0xff] }
   0x8   :  { %462 = vmatpush.bf16.msra.mxu0 %v2158_v6  ;;  %v2180_v15 = vld [vmem:[%s2867_s4 + $0xe0] sm:$0xff]  ;;  %v2179_v19 = vld [vmem:[%s2867_s4 + $0xd8] sm:$0xff]  ;;  %v2178_v23 = vld [vmem:[%s2867_s4 + $0xd0] sm:$0xff] }
   0x9   :  { %501 = vmatpush.bf16.msra.mxu3 %v2182_v7  ;;  %v2161_v24 = vld [vmem:[%s2867_s4 + $0x48] sm:$0xff]  ;;  %v49_v29 = vld [vmem:[%s2868_s0] sm:$0xff]  ;;  %v2199_v34 = vld [vmem:[%s2867_s4 + $0x178] sm:$0xff] }
   0xa   :  { %476 = vmatpush.bf16.msra.mxu1 %v2165_v8  ;;  %v2169_v25 = vld [vmem:[%s2867_s4 + $0x88] sm:$0xff]  ;;  %v2160_v30 = vld [vmem:[%s2867_s4 + $0x40] sm:$0xff]  ;;  %v156_v33 = vunpack.c.h.b16 %v49_v29  ;;  %v2207_v35 = vld [vmem:[%s2870_s6 + $0x38] sm:$0xff]  ;;  %v155_v38 = vunpack.c.l.b16 %v49_v29 }
   0xb   :  { %489 = vmatpush.bf16.msra.mxu2 %v2173_v9  ;;  %v2153_v26 = vld [vmem:[%s2867_s4 + $0x8] sm:$0xff]  ;;  %v2168_v31 = vld [vmem:[%s2867_s4 + $0x80] sm:$0xff]  ;;  %v2191_v40 = vld [vmem:[%s2867_s4 + $0x138] sm:$0xff] }
   0xc   :  { %463 = vmatpush.bf16.msra.mxu0 %v2157_v10  ;;  %v2177_v27 = vld [vmem:[%s2867_s4 + $0xc8] sm:$0xff]  ;;  %v2152_v36 = vld [vmem:[%s2867_s4] sm:$0xff]  ;;  %v2215_v41 = vld [vmem:[%s2870_s6 + $0x78] sm:$0xff]  ;;  %v162_v43 = vpack.c.b16 %v156_v33, %v156_v33  ;;  %v161_v46 = vpack.c.b16 %v155_v38, %v155_v38 }
   0xd   :  { %502 = vmatpush.bf16.msra.mxu3 %v2181_v11  ;;  %v50_v28 = vld [vmem:[%s2868_s0 + $0x8] sm:$0xff]  ;;  %v2176_v37 = vld [vmem:[%s2867_s4 + $0xc0] sm:$0xff]  ;;  %v2198_v44 = vld [vmem:[%s2867_s4 + $0x170] sm:$0xff] }
   0xe   :  { %477 = vmatpush.bf16.msra.mxu1 %v2164_v12  ;;  %v157_v32 = vunpack.c.l.b16 %v50_v28  ;;  %v158_v39 = vunpack.c.h.b16 %v50_v28  ;;  %v2206_v45 = vld [vmem:[%s2870_s6 + $0x30] sm:$0xff]  ;;  %v2197_v50 = vld [vmem:[%s2867_s4 + $0x168] sm:$0xff]  ;;  %v2196_v54 = vld [vmem:[%s2867_s4 + $0x160] sm:$0xff] }
   0xf   :  { %490 = vmatpush.bf16.msra.mxu2 %v2172_v13  ;;  %v2190_v48 = vld [vmem:[%s2867_s4 + $0x130] sm:$0xff]  ;;  %v2205_v51 = vld [vmem:[%s2870_s6 + $0x28] sm:$0xff]  ;;  %v2204_v55 = vld [vmem:[%s2870_s6 + $0x20] sm:$0xff] }
  0x10   :  { %464 = vmatpush.bf16.msra.mxu0 %v2156_v14  ;;  %v163_v42 = vpack.c.b16 %v157_v32, %v157_v32  ;;  %v164_v47 = vpack.c.b16 %v158_v39, %v158_v39  ;;  %v2214_v49 = vld [vmem:[%s2870_s6 + $0x70] sm:$0xff]  ;;  %v2189_v52 = vld [vmem:[%s2867_s4 + $0x128] sm:$0xff]  ;;  %v2188_v56 = vld [vmem:[%s2867_s4 + $0x120] sm:$0xff] }
  0x11   :  { %503 = vmatpush.bf16.msra.mxu3 %v2180_v15  ;;  %v2213_v53 = vld [vmem:[%s2870_s6 + $0x68] sm:$0xff]  ;;  %v2212_v57 = vld [vmem:[%s2870_s6 + $0x60] sm:$0xff]  ;;  %v2195_v58 = vld [vmem:[%s2867_s4 + $0x158] sm:$0xff] }
  0x12   :  { %478 = vmatpush.bf16.msra.mxu1 %v2163_v16  ;;  %v2203_v59 = vld [vmem:[%s2870_s6 + $0x18] sm:$0xff]  ;;  %v2194_v62 = vld [vmem:[%s2867_s4 + $0x150] sm:$0xff]  ;;  %v2193_v2 = vld [vmem:[%s2867_s4 + $0x148] sm:$0xff] }
  0x13   :  { %491 = vmatpush.bf16.msra.mxu2 %v2171_v17  ;;  %v2187_v60 = vld [vmem:[%s2867_s4 + $0x118] sm:$0xff]  ;;  %v2202_v63 = vld [vmem:[%s2870_s6 + $0x10] sm:$0xff]  ;;  %v2201_v3 = vld [vmem:[%s2870_s6 + $0x8] sm:$0xff] }
  0x14   :  { %465 = vmatpush.bf16.msra.mxu0 %v2155_v18  ;;  %v2211_v61 = vld [vmem:[%s2870_s6 + $0x58] sm:$0xff]  ;;  %v2186_v0 = vld [vmem:[%s2867_s4 + $0x110] sm:$0xff]  ;;  %v539_v4 = vld [vmem:[%s2871_s1] sm:$0xff] }
  0x15   :  { %504 = vmatpush.bf16.msra.mxu3 %v2179_v19  ;;  %v2210_v1 = vld [vmem:[%s2870_s6 + $0x50] sm:$0xff]  ;;  %v2185_v5 = vld [vmem:[%s2867_s4 + $0x108] sm:$0xff]  ;;  %v2192_v8 = vld [vmem:[%s2867_s4 + $0x140] sm:$0xff]  ;;  %v645_v11 = vunpack.c.l.b16 %v539_v4  ;;  %v646_v17 = vunpack.c.h.b16 %v539_v4 }
  0x16   :  { %479 = vmatpush.bf16.msra.mxu1 %v2162_v20  ;;  %v2209_v6 = vld [vmem:[%s2870_s6 + $0x48] sm:$0xff]  ;;  %v51_v7 = vld [vmem:[%s2868_s0 + $0x10] sm:$0xff]  ;;  %v2200_v9 = vld [vmem:[%s2870_s6] sm:$0xff] }
  0x17   :  { %492 = vmatpush.bf16.msra.mxu2 %v2170_v21  ;;  %v160_v10 = vunpack.c.h.b16 %v51_v7  ;;  %v2231_v12 = vld [vmem:[%s2870_s6 + $0xf8] sm:$0xff]  ;;  %v2184_v14 = vld [vmem:[%s2867_s4 + $0x100] sm:$0xff]  ;;  %v159_v16 = vunpack.c.l.b16 %v51_v7  ;;  %v651_v21 = vpack.c.b16 %v645_v11, %v645_v11  ;;  %v2229_v28 = vld [vmem:[%s2870_s6 + $0xe8] sm:$0xff] }
  0x18   :  { %466 = vmatpush.bf16.msra.mxu0 %v2154_v22  ;;  %v2239_v13 = vld [vmem:[%s2870_s6 + $0x138] sm:$0xff]  ;;  %v2208_v15 = vld [vmem:[%s2870_s6 + $0x40] sm:$0xff]  ;;  %v2230_v22 = vld [vmem:[%s2870_s6 + $0xf0] sm:$0xff] }
  0x19   :  { %505 = vmatpush.bf16.msra.mxu3 %v2178_v23  ;;  %v2223_v18 = vld [vmem:[%s2870_s6 + $0xb8] sm:$0xff]  ;;  %v166_v20 = vpack.c.b16 %v160_v10, %v160_v10  ;;  %v2238_v23 = vld [vmem:[%s2870_s6 + $0x130] sm:$0xff]  ;;  %v2237_v29 = vld [vmem:[%s2870_s6 + $0x128] sm:$0xff] }
  0x1a   :  { %480 = vmatpush.bf16.msra.mxu1 %v2161_v24  ;;  %v2247_v19 = vld [vmem:[%s2870_s6 + $0x178] sm:$0xff]  ;;  %v165_v24 = vpack.c.b16 %v159_v16, %v159_v16  ;;  %v2228_v32 = vld [vmem:[%s2870_s6 + $0xe0] sm:$0xff]  ;;  %v2270_v4 = vld [vmem:[%s2873_s10 + $0xb0] sm:$0xff] }
  0x1b   :  { %493 = vmatpush.bf16.msra.mxu2 %v2169_v25  ;;  %v652_v25 = vpack.c.b16 %v646_v17, %v646_v17  ;;  %v2236_v33 = vld [vmem:[%s2870_s6 + $0x120] sm:$0xff]  ;;  %v2219_v38 = vld [vmem:[%s2870_s6 + $0x98] sm:$0xff]  ;;  %v2253_v7 = vld [vmem:[%s2873_s10 + $0x28] sm:$0xff] }
  0x1c   :  { %467 = vmatpush.bf16.msra.mxu0 %v2153_v26  ;;  %v2222_v26 = vld [vmem:[%s2870_s6 + $0xb0] sm:$0xff]  ;;  %v2243_v39 = vld [vmem:[%s2870_s6 + $0x158] sm:$0xff]  ;;  %v2252_v11 = vld [vmem:[%s2873_s10 + $0x20] sm:$0xff] }
  0x1d   :  { %506 = vmatpush.bf16.msra.mxu3 %v2177_v27  ;;  %v2246_v27 = vld [vmem:[%s2870_s6 + $0x170] sm:$0xff]  ;;  %v2259_v16 = vld [vmem:[%s2873_s10 + $0x58] sm:$0xff] }
  0x1e   :  { %481 = vmatpush.bf16.msra.mxu1 %v2160_v30  ;;  %v2221_v30 = vld [vmem:[%s2870_s6 + $0xa8] sm:$0xff]  ;;  %v2278_v10 = vld [vmem:[%s2873_s10 + $0xf0] sm:$0xff]  ;;  %v2267_v17 = vld [vmem:[%s2873_s10 + $0x98] sm:$0xff] }
  0x1f   :  { %494 = vmatpush.bf16.msra.mxu2 %v2168_v31  ;;  %v2245_v31 = vld [vmem:[%s2870_s6 + $0x168] sm:$0xff] }
  0x20   :  { %468 = vmatpush.bf16.msra.mxu0 %v2152_v36  ;;  %v2227_v36 = vld [vmem:[%s2870_s6 + $0xd8] sm:$0xff] }
  0x21   :  { %507 = vmatpush.bf16.msra.mxu3 %v2176_v37  ;;  %482 = vmatmul.bf16.vlgmr.msra.gmra.mxu1 %v162_v43  ;;  %v2235_v37 = vld [vmem:[%s2870_s6 + $0x118] sm:$0xff]  ;;  %v2242_v43 = vld [vmem:[%s2870_s6 + $0x150] sm:$0xff] }
  0x22   :  { %526 = vmatpush.bf16.msrb.mxu1 %v2199_v34  ;;  %495 = vmatmul.bf16.vlgmr.msra.gmra.mxu2 %v163_v42  ;;  %v2220_v34 = vld [vmem:[%s2870_s6 + $0xa0] sm:$0xff]  ;;  %v2218_v42 = vld [vmem:[%s2870_s6 + $0x90] sm:$0xff] }
  0x23   :  { %951 = vmatpush.bf16.msrb.mxu2 %v2207_v35  ;;  %469 = vmatmul.bf16.vlgmr.msra.gmra.mxu0 %v161_v46  ;;  %v2244_v35 = vld [vmem:[%s2870_s6 + $0x160] sm:$0xff]  ;;  %v541_v46 = vld [vmem:[%s2871_s1 + $0x10] sm:$0xff] }
  0x24   :  { %513 = vmatpush.bf16.msrb.mxu0 %v2191_v40  ;;  %508 = vmatmul.bf16.vlgmr.msra.gmra.mxu3 %v164_v47  ;;  %v2226_v40 = vld [vmem:[%s2870_s6 + $0xd0] sm:$0xff]  ;;  %v2217_v47 = vld [vmem:[%s2870_s6 + $0x88] sm:$0xff] }
  0x25   :  { %964 = vmatpush.bf16.msrb.mxu3 %v2215_v41  ;;  %v2234_v41 = vld [vmem:[%s2870_s6 + $0x110] sm:$0xff] }
  0x26   :  { %527 = vmatpush.bf16.msrb.mxu1 %v2198_v44  ;;  %v2225_v44 = vld [vmem:[%s2870_s6 + $0xc8] sm:$0xff] }
  0x27   :  { %952 = vmatpush.bf16.msrb.mxu2 %v2206_v45  ;;  %v2233_v45 = vld [vmem:[%s2870_s6 + $0x108] sm:$0xff] }
  0x28   :  { %514 = vmatpush.bf16.msrb.mxu0 %v2190_v48  ;;  %v2241_v48 = vld [vmem:[%s2870_s6 + $0x148] sm:$0xff] }
  0x29   :  { %965 = vmatpush.bf16.msrb.mxu3 %v2214_v49  ;;  %v540_v49 = vld [vmem:[%s2871_s1 + $0x8] sm:$0xff] }
  0x2a   :  { %528 = vmatpush.bf16.msrb.mxu1 %v2197_v50  ;;  %v649_v50 = vunpack.c.l.b16 %v541_v46 }
  0x2b   :  { %953 = vmatpush.bf16.msrb.mxu2 %v2205_v51  ;;  %v648_v51 = vunpack.c.h.b16 %v540_v49 }
  0x2c   :  { %515 = vmatpush.bf16.msrb.mxu0 %v2189_v52  ;;  %v2224_v52 = vld [vmem:[%s2870_s6 + $0xc0] sm:$0xff] }
  0x2d   :  { %966 = vmatpush.bf16.msrb.mxu3 %v2213_v53  ;;  %v2232_v53 = vld [vmem:[%s2870_s6 + $0x100] sm:$0xff] }
  0x2e   :  { %529 = vmatpush.bf16.msrb.mxu1 %v2196_v54  ;;  %v2255_v54 = vld [vmem:[%s2873_s10 + $0x38] sm:$0xff] }
  0x2f   :  { %954 = vmatpush.bf16.msrb.mxu2 %v2204_v55  ;;  %v2263_v55 = vld [vmem:[%s2873_s10 + $0x78] sm:$0xff] }
  0x30   :  { %516 = vmatpush.bf16.msrb.mxu0 %v2188_v56  ;;  %v647_v56 = vunpack.c.l.b16 %v540_v49  ;;  %v2284_v49 = vld [vmem:[%s2873_s10 + $0x120] sm:$0xff] }
  0x31   :  { %967 = vmatpush.bf16.msrb.mxu3 %v2212_v57  ;;  %v650_v57 = vunpack.c.h.b16 %v541_v46  ;;  %v2285_v46 = vld [vmem:[%s2873_s10 + $0x128] sm:$0xff] }
  0x32   :  { %530 = vmatpush.bf16.msrb.mxu1 %v2195_v58  ;;  %v2216_v58 = vld [vmem:[%s2870_s6 + $0x80] sm:$0xff] }
  0x33   :  { %955 = vmatpush.bf16.msrb.mxu2 %v2203_v59  ;;  %v2240_v59 = vld [vmem:[%s2870_s6 + $0x140] sm:$0xff] }
  0x34   :  { %517 = vmatpush.bf16.msrb.mxu0 %v2187_v60  ;;  %v655_v60 = vpack.c.b16 %v649_v50, %v649_v50  ;;  %v2292_v50 = vld [vmem:[%s2873_s10 + $0x160] sm:$0xff] }
  0x35   :  { %968 = vmatpush.bf16.msrb.mxu3 %v2211_v61  ;;  %v654_v61 = vpack.c.b16 %v648_v51, %v648_v51  ;;  %v2283_v51 = vld [vmem:[%s2873_s10 + $0x118] sm:$0xff] }
  0x36   :  { %531 = vmatpush.bf16.msrb.mxu1 %v2194_v62  ;;  %v2271_v62 = vld [vmem:[%s2873_s10 + $0xb8] sm:$0xff] }
  0x37   :  { %956 = vmatpush.bf16.msrb.mxu2 %v2202_v63  ;;  %v653_v63 = vpack.c.b16 %v647_v56, %v647_v56  ;;  %v2289_v56 = vld [vmem:[%s2873_s10 + $0x148] sm:$0xff] }
  0x38   :  { %518 = vmatpush.bf16.msrb.mxu0 %v2186_v0  ;;  %v656_v0 = vpack.c.b16 %v650_v57, %v650_v57  ;;  %v1066_v57 = vld [vmem:[%s2877_s3 + $0x10] sm:$0xff] }
  0x39   :  { %969 = vmatpush.bf16.msrb.mxu3 %v2210_v1  ;;  %v1031_v1 = vld [vmem:[%s2874_s8 + $0x8] sm:$0xf] }
  0x3a   :  { %532 = vmatpush.bf16.msrb.mxu1 %v2193_v2  ;;  %v2254_v2 = vld [vmem:[%s2873_s10 + $0x30] sm:$0xff] }
  0x3b   :  { %957 = vmatpush.bf16.msrb.mxu2 %v2201_v3  ;;  %v2262_v3 = vld [vmem:[%s2873_s10 + $0x70] sm:$0xff] }
  0x3c   :  { %519 = vmatpush.bf16.msrb.mxu0 %v2185_v5  ;;  %v1030_v5 = vld [vmem:[%s2874_s8] sm:$0xff] }
  0x3d   :  { %970 = vmatpush.bf16.msrb.mxu3 %v2209_v6  ;;  %v2279_v6 = vld [vmem:[%s2873_s10 + $0xf8] sm:$0xff] }
  0x3e   :  { %533 = vmatpush.bf16.msrb.mxu1 %v2192_v8  ;;  %v2261_v8 = vld [vmem:[%s2873_s10 + $0x68] sm:$0xff] }
  0x3f   :  { %958 = vmatpush.bf16.msrb.mxu2 %v2200_v9  ;;  %v2269_v9 = vld [vmem:[%s2873_s10 + $0xa8] sm:$0xff] }
  0x40   :  { %520 = vmatpush.bf16.msrb.mxu0 %v2184_v14  ;;  %v2277_v14 = vld [vmem:[%s2873_s10 + $0xe8] sm:$0xff] }
  0x41   :  { %971 = vmatpush.bf16.msrb.mxu3 %v2208_v15  ;;  %534 = vmatmul.bf16.vlgmr.msrb.gmra.mxu1 %v166_v20  ;;  %v2251_v15 = vld [vmem:[%s2873_s10 + $0x18] sm:$0xff]  ;;  %v2258_v20 = vld [vmem:[%s2873_s10 + $0x50] sm:$0xff] }
  0x42   :  { %990 = vmatpush.bf16.msra.mxu1 %v2231_v12  ;;  %959 = vmatmul.bf16.vlgmr.msrb.gmra.mxu2 %v651_v21  ;;  %v2260_v12 = vld [vmem:[%s2873_s10 + $0x60] sm:$0xff] }
  0x43   :  { %1003 = vmatpush.bf16.msra.mxu2 %v2239_v13  ;;  %521 = vmatmul.bf16.vlgmr.msrb.gmra.mxu0 %v165_v24  ;;  %v2268_v13 = vld [vmem:[%s2873_s10 + $0xa0] sm:$0xff]  ;;  %v2249_v24 = vld [vmem:[%s2873_s10 + $0x8] sm:$0xff] }
  0x44   :  { %977 = vmatpush.bf16.msra.mxu0 %v2223_v18  ;;  %972 = vmatmul.bf16.vlgmr.msrb.gmra.mxu3 %v652_v25  ;;  %v2276_v18 = vld [vmem:[%s2873_s10 + $0xe0] sm:$0xff]  ;;  %v2257_v25 = vld [vmem:[%s2873_s10 + $0x48] sm:$0xff] }
  0x45   :  { %1016 = vmatpush.bf16.msra.mxu3 %v2247_v19  ;;  %v2250_v19 = vld [vmem:[%s2873_s10 + $0x10] sm:$0xff]  ;;  %v1029_v21 = vld [vmem:[%s2875_s2] sm:$0xff] }
  0x46   :  { %991 = vmatpush.bf16.msra.mxu1 %v2230_v22  ;;  %v2266_v22 = vld [vmem:[%s2873_s10 + $0x90] sm:$0xff] }
  0x47   :  { %1004 = vmatpush.bf16.msra.mxu2 %v2238_v23  ;;  %v2275_v23 = vld [vmem:[%s2873_s10 + $0xd8] sm:$0xff] }
  0x48   :  { %978 = vmatpush.bf16.msra.mxu0 %v2222_v26  ;;  %v1064_v26 = vld [vmem:[%s2877_s3] sm:$0xff] }
  0x49   :  { %1017 = vmatpush.bf16.msra.mxu3 %v2246_v27  ;;  %v2265_v27 = vld [vmem:[%s2873_s10 + $0x88] sm:$0xff] }
  0x4a   :  { %992 = vmatpush.bf16.msra.mxu1 %v2229_v28  ;;  %v2274_v28 = vld [vmem:[%s2873_s10 + $0xd0] sm:$0xff] }
  0x4b   :  { %1005 = vmatpush.bf16.msra.mxu2 %v2237_v29  ;;  %v1171_v29 = vunpack.c.h.b16 %v1064_v26 }
  0x4c   :  { %979 = vmatpush.bf16.msra.mxu0 %v2221_v30  ;;  %v1170_v30 = vunpack.c.l.b16 %v1064_v26 }
  0x4d   :  { %1018 = vmatpush.bf16.msra.mxu3 %v2245_v31  ;;  %v1065_v31 = vld [vmem:[%s2877_s3 + $0x8] sm:$0xff] }
  0x4e   :  { %993 = vmatpush.bf16.msra.mxu1 %v2228_v32  ;;  %v2248_v32 = vld [vmem:[%s2873_s10] sm:$0xff] }
  0x4f   :  { %1006 = vmatpush.bf16.msra.mxu2 %v2236_v33  ;;  %v2256_v33 = vld [vmem:[%s2873_s10 + $0x40] sm:$0xff] }
  0x50   :  { %980 = vmatpush.bf16.msra.mxu0 %v2220_v34  ;;  %v2287_v34 = vld [vmem:[%s2873_s10 + $0x138] sm:$0xff] }
  0x51   :  { %1019 = vmatpush.bf16.msra.mxu3 %v2244_v35  ;;  %v2295_v35 = vld [vmem:[%s2873_s10 + $0x178] sm:$0xff] }
  0x52   :  { %994 = vmatpush.bf16.msra.mxu1 %v2227_v36  ;;  %v2264_v36 = vld [vmem:[%s2873_s10 + $0x80] sm:$0xff] }
  0x53   :  { %1007 = vmatpush.bf16.msra.mxu2 %v2235_v37  ;;  %v1172_v37 = vunpack.c.l.b16 %v1065_v31 }
  0x54   :  { %981 = vmatpush.bf16.msra.mxu0 %v2219_v38  ;;  %v2273_v38 = vld [vmem:[%s2873_s10 + $0xc8] sm:$0xff] }
  0x55   :  { %1020 = vmatpush.bf16.msra.mxu3 %v2243_v39  ;;  %v1177_v39 = vpack.c.b16 %v1171_v29, %v1171_v29 }
  0x56   :  { %995 = vmatpush.bf16.msra.mxu1 %v2226_v40  ;;  %v1176_v40 = vpack.c.b16 %v1170_v30, %v1170_v30 }
  0x57   :  { %1008 = vmatpush.bf16.msra.mxu2 %v2234_v41  ;;  %v2286_v41 = vld [vmem:[%s2873_s10 + $0x130] sm:$0xff] }
  0x58   :  { %982 = vmatpush.bf16.msra.mxu0 %v2218_v42  ;;  %v2294_v42 = vld [vmem:[%s2873_s10 + $0x170] sm:$0xff] }
  0x59   :  { %1021 = vmatpush.bf16.msra.mxu3 %v2242_v43  ;;  %v1178_v43 = vpack.c.b16 %v1172_v37, %v1172_v37 }
  0x5a   :  { %996 = vmatpush.bf16.msra.mxu1 %v2225_v44  ;;  %v2272_v44 = vld [vmem:[%s2873_s10 + $0xc0] sm:$0xff] }
  0x5b   :  { %1009 = vmatpush.bf16.msra.mxu2 %v2233_v45  ;;  %v1173_v45 = vunpack.c.h.b16 %v1065_v31 }
  0x5c   :  { %983 = vmatpush.bf16.msra.mxu0 %v2217_v47  ;;  %v2293_v47 = vld [vmem:[%s2873_s10 + $0x168] sm:$0xff] }
  0x5d   :  { %1022 = vmatpush.bf16.msra.mxu3 %v2241_v48  ;;  %v1179_v48 = vpack.c.b16 %v1173_v45, %v1173_v45  ;;  %v19_v45 = vstv %s2880_s13 }
  0x5e   :  { %997 = vmatpush.bf16.msra.mxu1 %v2224_v52  ;;  %v2291_v52 = vld [vmem:[%s2873_s10 + $0x158] sm:$0xff]  ;;  %20 = vst [vmem:[#allocation2] sm:$0x1] %v19_v45 }
  0x5f   :  { %1010 = vmatpush.bf16.msra.mxu2 %v2232_v53  ;;  %v2282_v53 = vld [vmem:[%s2873_s10 + $0x110] sm:$0xff] }
  0x60   :  { %984 = vmatpush.bf16.msra.mxu0 %v2216_v58  ;;  %v1174_v58 = vunpack.c.l.b16 %v1066_v57 }
  0x61   :  { %1023 = vmatpush.bf16.msra.mxu3 %v2240_v59  ;;  %998 = vmatmul.bf16.vlgmr.msra.gmra.mxu1 %v654_v61  ;;  %v1175_v59 = vunpack.c.h.b16 %v1066_v57  ;;  %v2288_v61 = vld [vmem:[%s2873_s10 + $0x140] sm:$0xff] }
  0x62   :  { %1476 = vmatpush.bf16.msrb.mxu1 %v2255_v54  ;;  %1011 = vmatmul.bf16.vlgmr.msra.gmra.mxu2 %v655_v60  ;;  %v2290_v54 = vld [vmem:[%s2873_s10 + $0x150] sm:$0xff]  ;;  %v2280_v60 = vld [vmem:[%s2873_s10 + $0x100] sm:$0xff] }
  0x63   :  { %1489 = vmatpush.bf16.msrb.mxu2 %v2263_v55  ;;  %985 = vmatmul.bf16.vlgmr.msra.gmra.mxu0 %v653_v63  ;;  %v2281_v55 = vld [vmem:[%s2873_s10 + $0x108] sm:$0xff]  ;;  %v1181_v63 = vpack.c.b16 %v1175_v59, %v1175_v59 }
  0x64   :  { %1958 = vmatpush.msk.msrb.mxu0 %vm1040_vm0, %v1031_v1  ;;  %1024 = vmatmul.bf16.vlgmr.msra.gmra.mxu3 %v656_v0  ;;  %v2298_v0 = vld [vmem:[%s2869_s5] ss:$0 sm:$0xff] }
  0x65   :  { %1502 = vmatpush.bf16.msrb.mxu3 %v2271_v62  ;;  %v1180_v62 = vpack.c.b16 %v1174_v58, %v1174_v58 }
  0x66   :  { %1477 = vmatpush.bf16.msrb.mxu1 %v2254_v2  ;;  %1059 = vmatpush.msrb.mxu0 %v1030_v5 }
  0x67   :  { %1490 = vmatpush.bf16.msrb.mxu2 %v2262_v3 }
  0x68   :  { %1515 = vmatpush.bf16.msra.mxu0 %v2279_v6 }
  0x69   :  { %1503 = vmatpush.bf16.msrb.mxu3 %v2270_v4 }
  0x6a   :  { %1478 = vmatpush.bf16.msrb.mxu1 %v2253_v7 }
  0x6b   :  { %1491 = vmatpush.bf16.msrb.mxu2 %v2261_v8 }
  0x6c   :  { %1516 = vmatpush.bf16.msra.mxu0 %v2278_v10 }
  0x6d   :  { %1504 = vmatpush.bf16.msrb.mxu3 %v2269_v9 }
  0x6e   :  { %1479 = vmatpush.bf16.msrb.mxu1 %v2252_v11 }
  0x6f   :  { %1492 = vmatpush.bf16.msrb.mxu2 %v2260_v12 }
  0x70   :  { %1517 = vmatpush.bf16.msra.mxu0 %v2277_v14 }
  0x71   :  { %1505 = vmatpush.bf16.msrb.mxu3 %v2268_v13 }
  0x72   :  { %1480 = vmatpush.bf16.msrb.mxu1 %v2251_v15 }
  0x73   :  { %1493 = vmatpush.bf16.msrb.mxu2 %v2259_v16  ;;  %1959 = vmatmul.msk.f32.vlgmr.msrb.gmra.mxu0 %vm1036_vm1, %v1029_v21  ;;  %v2299_v16 = vld [vmem:[%s2872_s7] ss:$0 sm:$0xff] }
  0x74   :  { %1518 = vmatpush.bf16.msra.mxu0 %v2276_v18 }
  0x75   :  { %1506 = vmatpush.bf16.msrb.mxu3 %v2267_v17 }
  0x76   :  { %1481 = vmatpush.bf16.msrb.mxu1 %v2250_v19 }
  0x77   :  { %1494 = vmatpush.bf16.msrb.mxu2 %v2258_v20 }
  0x78   :  { %1519 = vmatpush.bf16.msra.mxu0 %v2275_v23 }
  0x79   :  { %1507 = vmatpush.bf16.msrb.mxu3 %v2266_v22 }
  0x7a   :  { %1482 = vmatpush.bf16.msrb.mxu1 %v2249_v24 }
  0x7b   :  { %1495 = vmatpush.bf16.msrb.mxu2 %v2257_v25 }
  0x7c   :  { %1520 = vmatpush.bf16.msra.mxu0 %v2274_v28 }
  0x7d   :  { %1508 = vmatpush.bf16.msrb.mxu3 %v2265_v27 }
  0x7e   :  { %1483 = vmatpush.bf16.msrb.mxu1 %v2248_v32 }
  0x7f   :  { %1496 = vmatpush.bf16.msrb.mxu2 %v2256_v33 }
  0x80   :  { %1521 = vmatpush.bf16.msra.mxu0 %v2273_v38 }
  0x81   :  { %1509 = vmatpush.bf16.msrb.mxu3 %v2264_v36  ;;  %1484 = vmatmul.bf16.vlgmr.msrb.gmra.mxu1 %v1176_v40 }
  0x82   :  { %1528 = vmatpush.bf16.msra.mxu1 %v2287_v34  ;;  %1497 = vmatmul.bf16.vlgmr.msrb.gmra.mxu2 %v1177_v39 }
  0x83   :  { %1541 = vmatpush.bf16.msra.mxu2 %v2295_v35 }
  0x84   :  { %1510 = vmatmul.bf16.vlgmr.msrb.gmra.mxu3 %v1178_v43  ;;  %1522 = vmatpush.bf16.msra.mxu0 %v2272_v44 }
  0x86   :  { %1529 = vmatpush.bf16.msra.mxu1 %v2286_v41 }
  0x87   :  { %1542 = vmatpush.bf16.msra.mxu2 %v2294_v42  ;;  %1523 = vmatmul.bf16.vlgmr.msra.gmra.mxu0 %v1179_v48  ;;  %v2300_v48 = vld [vmem:[%s2876_s11] ss:$0 sm:$0xff] }
  0x8a   :  { %1530 = vmatpush.bf16.msra.mxu1 %v2285_v46 }
  0x8b   :  { %1543 = vmatpush.bf16.msra.mxu2 %v2293_v47 }
  0x8e   :  { %1531 = vmatpush.bf16.msra.mxu1 %v2284_v49 }
  0x8f   :  { %1544 = vmatpush.bf16.msra.mxu2 %v2292_v50 }
  0x92   :  { %1532 = vmatpush.bf16.msra.mxu1 %v2283_v51  ;;  %v1564_v51 = vld [vmem:[#allocation2] sm:$0x1] }
  0x93   :  { %1545 = vmatpush.bf16.msra.mxu2 %v2291_v52  ;;  %2296 = vpush %v1564_v51 }
  0x96   :  { %1533 = vmatpush.bf16.msra.mxu1 %v2282_v53 }
  0x97   :  { %1546 = vmatpush.bf16.msra.mxu2 %v2290_v54 }
  0x9a   :  { %1534 = vmatpush.bf16.msra.mxu1 %v2281_v55  ;;  %v2301_v55 = vld [vmem:[%s2878_s9] ss:$0 sm:$0xff] }
  0x9b   :  { %1547 = vmatpush.bf16.msra.mxu2 %v2289_v56 }
  0x9e   :  { %1535 = vmatpush.bf16.msra.mxu1 %v2280_v60  ;;  %v483_v1 = vpop.f32.mrf.mxu1 }
  0x9f   :  { %1548 = vmatpush.bf16.msra.mxu2 %v2288_v61 }
  0xa0   :  { %v470_v2 = vpop.f32.mrf.mxu0 }
  0xa1   :  { %1536 = vmatmul.bf16.vlgmr.msra.gmra.mxu1 %v1180_v62  ;;  %v471_v3 = vadd.f32 %v2298_v0, %v470_v2 }
  0xa2   :  { %1549 = vmatmul.bf16.vlgmr.msra.gmra.mxu2 %v1181_v63  ;;  %v2302_v63 = vld [vmem:[%s2879_s12] ss:$0 sm:$0xff] }
  0xa3   :  { %v484_v4 = vadd.f32 %v483_v1, %v471_v3 }
  0xa5   :  { %v496_v5 = vpop.f32.mrf.mxu2 }
  0xa6   :  { %v497_v6 = vadd.f32 %v496_v5, %v484_v4  ;;  %v485_v7 = vpop.f32.mrf.mxu1 }
  0xa7   :  { %v509_v8 = vpop.f32.mrf.mxu3 }
  0xa8   :  { %v510_v9 = vadd.f32 %v509_v8, %v497_v6  ;;  %v472_v10 = vpop.f32.mrf.mxu0 }
  0xad   :  { %v498_v11 = vpop.f32.mrf.mxu2 }
  0xaf   :  { %v511_v12 = vpop.f32.mrf.mxu3 }
  0xbe   :  { %v535_v13 = vpop.f32.mrf.mxu1 }
  0xc0   :  { %v522_v14 = vpop.f32.mrf.mxu0 }
  0xc1   :  { %v523_v15 = vadd.f32 %v522_v14, %v510_v9 }
  0xc3   :  { %v536_v17 = vadd.f32 %v535_v13, %v523_v15 }
  0xc4   :  { %s2297_s21 = spop %2296 }
  0xc5   :  { %v960_v18 = vpop.f32.mrf.mxu2  ;;  %v1566_v3 = vstv %s2297_s21 }
  0xc6   :  { %v961_v19 = vadd.f32 %v2299_v16, %v960_v18  ;;  %v537_v21 = vpop.f32.mrf.mxu1 }
  0xc7   :  { %v973_v20 = vpop.f32.mrf.mxu3 }
  0xc8   :  { %v974_v22 = vadd.f32 %v973_v20, %v961_v19  ;;  %v524_v23 = vpop.f32.mrf.mxu0 }
  0xcd   :  { %v962_v24 = vpop.f32.mrf.mxu2 }
  0xcf   :  { %v975_v25 = vpop.f32.mrf.mxu3 }
  0xde   :  { %v999_v26 = vpop.f32.mrf.mxu1 }
  0xe0   :  { %v986_v27 = vpop.f32.mrf.mxu0 }
  0xe1   :  { %v987_v28 = vadd.f32 %v986_v27, %v974_v22 }
  0xe3   :  { %v1000_v29 = vadd.f32 %v999_v26, %v987_v28 }
  0xe5   :  { %v1012_v30 = vpop.f32.mrf.mxu2 }
  0xe6   :  { %v1013_v31 = vadd.f32 %v1012_v30, %v1000_v29  ;;  %v1001_v33 = vpop.f32.mrf.mxu1 }
  0xe7   :  { %v1025_v32 = vpop.f32.mrf.mxu3 }
  0xe8   :  { %v1026_v34 = vadd.f32 %v1025_v32, %v1013_v31  ;;  %v988_v35 = vpop.f32.mrf.mxu0 }
  0xea   :  { %v1554_v36 = vmax.f32 %v536_v17, %v1026_v34 }
  0xed   :  { %v1014_v37 = vpop.f32.mrf.mxu2 }
  0xef   :  { %v1027_v38 = vpop.f32.mrf.mxu3 }
  0xf0   :  { %v1061_v39 = vpop.f32.mrf.mxu0 }
  0xf1   :  { %v1062_v59 = vadd.f32 %v2301_v55, %v1061_v39 }
  0xfe   :  { %v1485_v40 = vpop.f32.mrf.mxu1 }
  0xff   :  { %v1486_v50 = vadd.f32 %v2300_v48, %v1485_v40 }
 0x104   :  { %v1524_v42 = vpop.f32.mrf.mxu0 }
 0x105   :  { %v1498_v41 = vpop.f32.mrf.mxu2 }
 0x106   :  { %v1487_v43 = vpop.f32.mrf.mxu1  ;;  %v1499_v52 = vadd.f32 %v1498_v41, %v1486_v50 }
 0x107   :  { %v1511_v44 = vpop.f32.mrf.mxu3 }
 0x108   :  { %v1512_v53 = vadd.f32 %v1511_v44, %v1499_v52 }
 0x10a   :  { %v1525_v56 = vadd.f32 %v1524_v42, %v1512_v53 }
 0x10c   :  { %v1526_v47 = vpop.f32.mrf.mxu0 }
 0x10d   :  { %v1500_v46 = vpop.f32.mrf.mxu2 }
 0x10f   :  { %v1513_v49 = vpop.f32.mrf.mxu3 }
 0x11e   :  { %v1537_v54 = vpop.f32.mrf.mxu1 }
 0x11f   :  { %v1538_v57 = vadd.f32 %v1537_v54, %v1525_v56 }
 0x125   :  { %v1550_v58 = vpop.f32.mrf.mxu2 }
 0x126   :  { %v1551_v60 = vadd.f32 %v1550_v58, %v1538_v57  ;;  %v1539_v61 = vpop.f32.mrf.mxu1 }
 0x128   :  { %v1555_v62 = vmax.f32 %v1062_v59, %v1551_v60 }
 0x12a   :  { %v1556_v0 = vmax.f32 %v1554_v36, %v1555_v62 }
 0x12c   :  { %v1561_v1 = vmul.f32 %v2302_v63, %v1556_v0 }
 0x12d   :  { %v1552_v2 = vpop.f32.mrf.mxu2 }
 0x12e   :  { %1562 = vadd.xlane.f32.xlu0 %v1561_v1 }
 0x1a1   :  { %v1563_v4 = vpop.xlane.xlu0 %1562 }
 0x1a2   :  { %v1567_v5 = vadd.f32 %v1566_v3, %v1563_v4 }
 0x1a4   :  { %1569 = vst.msk [vmem:[%s2881_s14] sm:$0xff] %vm1568_vm2, %v1567_v5 }

</bundles_post_ra>
